<compile_context>
chip_gen: v6e
topology: v6e:2x2x1
jax: 0.10.0
libtpu: 0.0.40
codegen_flags: <defaults>
</compile_context>

<pallas_src>
import functools
import math

import jax
import jax.numpy as jnp
from jax.experimental import pallas as pl
from jax.experimental.pallas import tpu as pltpu


def _round_up(v, m):
    return ((v + m - 1) // m) * m


# ----------------------------------------------------------------------------
# Kernel: fused-prefix matmul -> ReLU -> wb -> ReLU -> wc (lane-dense output)
# ----------------------------------------------------------------------------
def _mlp_head_kernel(act_ref, wf_ref, wb_ref, wc_ref, bias_ref, out_ref,
                     *, hidden, out_cols):
    f32, bf16 = jnp.float32, jnp.bfloat16

    act = act_ref[...].astype(bf16)                                   # (bb, in_dim)
    # Fused prefix: BN + linear1{x,y} + MHA V-proj + MHA out-proj + mlp[0]
    h = jnp.dot(act, wf_ref[...], preferred_element_type=f32) + bias_ref[0:1, :hidden]
    h = jnp.maximum(h, 0.0)                                           # ReLU (f32 VPU)
    # mlp[2]
    h = jnp.dot(h.astype(bf16), wb_ref[...],
                preferred_element_type=f32) + bias_ref[1:2, :hidden]
    h = jnp.maximum(h, 0.0)                                           # ReLU (f32 VPU)
    # mlp[4], output columns zero-padded to a 128-lane multiple
    out = jnp.dot(h.astype(bf16), wc_ref[...],
                  preferred_element_type=f32) + bias_ref[2:3, :out_cols]
    out_ref[...] = out                                                # unmasked store


# ----------------------------------------------------------------------------
# Parameter construction (PyTorch-like init; weights stored (in, out))
# ----------------------------------------------------------------------------
def init_raw_params(key, classifier_size, num_class, hidden_size):
    def linear(k, fan_in, fan_out):
        k1, k2 = jax.random.split(k)
        bound = 1.0 / math.sqrt(fan_in)
        w = jax.random.uniform(k1, (fan_in, fan_out), jnp.float32, -bound, bound)
        b = jax.random.uniform(k2, (fan_out,), jnp.float32, -bound, bound)
        return w, b

    ks = jax.random.split(key, 9)
    w1y, b1y = linear(ks[0], classifier_size, hidden_size)     # linear1y
    w1x, b1x = linear(ks[1], num_class, hidden_size)           # linear1x

    # BatchNorm1d(classifier_size), eval semantics (running stats + affine)
    bn_gamma = jnp.ones((classifier_size,), jnp.float32)
    bn_beta = jnp.zeros((classifier_size,), jnp.float32)
    bn_mean = 0.1 * jax.random.normal(ks[2], (classifier_size,), jnp.float32)
    bn_var = 1.0 + 0.05 * jax.random.uniform(ks[3], (classifier_size,), jnp.float32)

    # MHA (num_heads=1): xavier-uniform in_proj, zero in_proj / out_proj biases
    limit = math.sqrt(6.0 / (2 * hidden_size))
    in_proj = jax.random.uniform(ks[4], (hidden_size, 3 * hidden_size),
                                 jnp.float32, -limit, limit)
    wq, wk, wv = jnp.split(in_proj, 3, axis=1)
    zeros_h = jnp.zeros((hidden_size,), jnp.float32)
    wo, _ = linear(ks[5], hidden_size, hidden_size)
    bo = zeros_h

    # MLP head: H->H, ReLU, H->H, ReLU, H->num_class
    wa, ba = linear(ks[6], hidden_size, hidden_size)
    wb, bb_ = linear(ks[7], hidden_size, hidden_size)
    wc, bc = linear(ks[8], hidden_size, num_class)

    return dict(
        w1x=w1x, b1x=b1x, w1y=w1y, b1y=b1y,
        bn_gamma=bn_gamma, bn_beta=bn_beta, bn_mean=bn_mean, bn_var=bn_var,
        wq=wq, wk=wk, wv=wv, bq=zeros_h, bk=zeros_h, bv=zeros_h, wo=wo, bo=bo,
        wa=wa, ba=ba, wb=wb, bb=bb_, wc=wc, bc=bc,
    )


def pack_params(raw, classifier_size, num_class, hidden_size):
    """Fold the whole linear prefix (in f32) into one weight/bias per variant."""
    f32, bf16 = jnp.float32, jnp.bfloat16
    H = hidden_size
    eps = 1e-5

    # Folded eval BN: y_bn = y * scale + shift  ->  folded into linear1y
    scale = raw["bn_gamma"] * jax.lax.rsqrt(raw["bn_var"] + eps)
    shift = raw["bn_beta"] - raw["bn_mean"] * scale
    w1y_f = scale[:, None] * raw["w1y"]
    b1y_f = shift @ raw["w1y"] + raw["b1y"]

    # Softmax over the single key position == 1 exactly, so the q/k path is dead and
    # kv -> V-proj -> out-proj -> mlp[0] is a pure linear chain: fold it.
    def fold_prefix(w_in, b_in):
        w = w_in @ raw["wv"]
        b = b_in @ raw["wv"] + raw["bv"]
        w = w @ raw["wo"]
        b = b @ raw["wo"] + raw["bo"]
        w = w @ raw["wa"]
        b = b @ raw["wa"] + raw["ba"]
        return w, b

    wf_y, bf_y = fold_prefix(w1y_f, b1y_f)                  # (C, H), (H,)
    wf_x, bf_x = fold_prefix(raw["w1x"], raw["b1x"])        # (num_class, H), (H,)

    # Final projection padded to a lane-dense (>=128, multiple of 128) width.
    out_cols = max(128, _round_up(num_class, 128))
    wc_pad = jnp.zeros((H, out_cols), f32).at[:, :num_class].set(raw["wc"])
    bc_pad = jnp.zeros((out_cols,), f32).at[:num_class].set(raw["bc"])

    # Bias slab (f32): row 0 = fused-prefix bias, row 1 = bb, row 2 = bc_pad.
    W = max(H, out_cols)

    def row(v):
        return jnp.zeros((W,), f32).at[:v.shape[0]].set(v)

    def bias_slab(bf):
        return (jnp.zeros((8, W), f32)
                .at[0].set(row(bf))
                .at[1].set(row(raw["bb"]))
                .at[2].set(row(bc_pad)))

    return dict(
        hidden=H, num_class=num_class, out_cols=out_cols,
        wf_x=wf_x.astype(bf16),          # (num_class, H)
        wf_y=wf_y.astype(bf16),          # (classifier_size, H)
        wb=raw["wb"].astype(bf16),       # (H, H)
        wc=wc_pad.astype(bf16),          # (H, out_cols)
        bias_x=bias_slab(bf_x),          # (8, W) f32
        bias_y=bias_slab(bf_y),          # (8, W) f32
    )


# ----------------------------------------------------------------------------
# Wrapper
# ----------------------------------------------------------------------------
def _num_parallel_cores():
    """2-way grid split only on chips with 2 TensorCores sharing a 'parallel' grid."""
    try:
        kind = jax.devices()[0].device_kind.lower()
    except Exception:
        return 1
    return 2 if any(t in kind for t in ("v7", "v4", "v5p")) else 1


def mha_classifier2_forward(packed, x, y=None, *, block_cap=4096):
    batch = x.shape[0]
    H = packed["hidden"]
    num_class = packed["num_class"]
    out_cols = packed["out_cols"]

    # Trace-time specialization on `y is None`: pick the matching fused operands.
    if y is None:
        act, wf, bias = x, packed["wf_x"], packed["bias_x"]
    else:
        act, wf, bias = y, packed["wf_y"], packed["bias_y"]
    if act.dtype != jnp.bfloat16:
        act = act.astype(jnp.bfloat16)           # halve activation HBM/DMA traffic

    # Batch blocking: whole batch on single-TC chips; 2-way balanced split on v7x.
    # block_cap keeps the double-buffered working set well under scoped VMEM defaults.
    num_splits = _num_parallel_cores()
    bb = _round_up(pl.cdiv(batch, num_splits), 8)
    bb = min(bb, _round_up(block_cap, 8))
    if bb >= batch:
        bb = batch                               # single full block (full-dim rule)
    grid = (pl.cdiv(batch, bb),)

    def full(a):     # parameter slab: whole array, resident across grid steps
        return pl.BlockSpec(a.shape, lambda i, nd=a.ndim: (0,) * nd)

    kern = functools.partial(_mlp_head_kernel, hidden=H, out_cols=out_cols)
    out_pad = pl.pallas_call(
        kern,
        out_shape=jax.ShapeDtypeStruct((batch, out_cols), jnp.float32),
        grid=grid,
        in_specs=[pl.BlockSpec((bb, act.shape[1]), lambda i: (i, 0)),
                  full(wf), full(packed["wb"]), full(packed["wc"]), full(bias)],
        out_specs=pl.BlockSpec((bb, out_cols), lambda i: (i, 0)),
        compiler_params=pltpu.CompilerParams(dimension_semantics=("parallel",)),
    )(act, wf, packed["wb"], packed["wc"], bias)

    return out_pad[:, :num_class]


# ----------------------------------------------------------------------------
# Pure-JAX reference (full module semantics, f32, incl. the q/k/softmax path)
# ----------------------------------------------------------------------------
def reference_forward(raw, x, y=None):
    xq = x @ raw["w1x"] + raw["b1x"]
    if y is None:
        kv = xq
    else:
        y_bn = (y - raw["bn_mean"]) / jnp.sqrt(raw["bn_var"] + 1e-5) \
               * raw["bn_gamma"] + raw["bn_beta"]
        kv = y_bn @ raw["w1y"] + raw["b1y"]
    q = xq @ raw["wq"] + raw["bq"]
    k = kv @ raw["wk"] + raw["bk"]
    v = kv @ raw["wv"] + raw["bv"]
    score = jnp.sum(q * k, axis=-1, keepdims=True) / math.sqrt(q.shape[-1])
    attn_w = jax.nn.softmax(score, axis=-1)       # single key position -> exactly 1
    attn_out = (attn_w * v) @ raw["wo"] + raw["bo"]
    h = jnp.maximum(attn_out @ raw["wa"] + raw["ba"], 0.0)
    h = jnp.maximum(h @ raw["wb"] + raw["bb"], 0.0)
    return h @ raw["wc"] + raw["bc"]


if __name__ == "__main__":
    classifier_size, num_class, hidden_size = 16, 8, 32

    key = jax.random.PRNGKey(0)
    kp, kx, ky, kx2, ky2 = jax.random.split(key, 5)
    raw = init_raw_params(kp, classifier_size, num_class, hidden_size)
    packed = pack_params(raw, classifier_size, num_class, hidden_size)

    # Small batch: single-block path, both y-provided and y=None variants.
    batch = 4
    x = jax.random.normal(kx, (batch, num_class), jnp.float32)
    y = jax.random.normal(ky, (batch, classifier_size), jnp.float32)

    out_y = jax.block_until_ready(mha_classifier2_forward(packed, x, y))
    out_n = jax.block_until_ready(mha_classifier2_forward(packed, x, None))
    ref_y = reference_forward(raw, x, y)
    ref_n = reference_forward(raw, x, None)

    assert out_y.shape == (batch, num_class)
    assert out_n.shape == (batch, num_class)
    assert jnp.allclose(out_y, ref_y, rtol=5e-2, atol=5e-2)
    assert jnp.allclose(out_n, ref_n, rtol=5e-2, atol=5e-2)

    # Larger batch: exercises the batch-tiled 1-D grid (2-way split on dual-TC chips).
    big = 1024
    xb = jax.random.normal(kx2, (big, num_class), jnp.float32)
    yb = jax.random.normal(ky2, (big, classifier_size), jnp.float32)
    out_big = jax.block_until_ready(mha_classifier2_forward(packed, xb, yb))
    ref_big = reference_forward(raw, xb, yb)
    assert out_big.shape == (big, num_class)
    assert jnp.allclose(out_big, ref_big, rtol=5e-2, atol=5e-2)

    print("KERNEL_OK")
</pallas_src>

<mosaic_0001>
module attributes {stable_mosaic.version = 11 : i64} {
  func.func @_mlp_head_kernel(%arg0: i32, %arg1: memref<4x16xbf16, #tpu.memory_space<vmem>>, %arg2: memref<16x32xbf16, #tpu.memory_space<vmem>>, %arg3: memref<32x32xbf16, #tpu.memory_space<vmem>>, %arg4: memref<32x128xbf16, #tpu.memory_space<vmem>>, %arg5: memref<8x128xf32, #tpu.memory_space<vmem>>, %arg6: memref<4x128xf32, #tpu.memory_space<vmem>>) attributes {dimension_semantics = [#tpu.dimension_semantics<parallel>], iteration_bounds = array<i64: 1>, scalar_prefetch = 0 : i64, scratch_operands = 0 : i64, tpu.core_type = #tpu.core_type<tc>, window_params = [{transform_indices = @transform_0, window_bounds = array<i64: 4, 16>}, {pipeline_mode = #tpu.pipeline_mode<synchronous>, transform_indices = @transform_1, window_bounds = array<i64: 16, 32>}, {pipeline_mode = #tpu.pipeline_mode<synchronous>, transform_indices = @transform_2, window_bounds = array<i64: 32, 32>}, {pipeline_mode = #tpu.pipeline_mode<synchronous>, transform_indices = @transform_3, window_bounds = array<i64: 32, 128>}, {pipeline_mode = #tpu.pipeline_mode<synchronous>, transform_indices = @transform_4, window_bounds = array<i64: 8, 128>}, {transform_indices = @transform_5, window_bounds = array<i64: 4, 128>}]} {
    %c0 = arith.constant 0 : index
    %c0_0 = arith.constant 0 : index
    %0 = vector.load %arg1[%c0, %c0_0] : memref<4x16xbf16, #tpu.memory_space<vmem>>, vector<4x16xbf16>
    %c0_1 = arith.constant 0 : index
    %c0_2 = arith.constant 0 : index
    %1 = vector.load %arg2[%c0_1, %c0_2] : memref<16x32xbf16, #tpu.memory_space<vmem>>, vector<16x32xbf16>
    %cst = arith.constant dense<0.000000e+00> : vector<4x32xf32>
    %2 = tpu.matmul %0, %1, %cst {dimension_numbers = #tpu.dot_dimension_numbers<[1], [0], [0], [1], [0, 0, 1, 1], [], []>} : vector<4x16xbf16>, vector<16x32xbf16>, vector<4x32xf32> -> vector<4x32xf32>
    %c0_3 = arith.constant 0 : index
    %c0_4 = arith.constant 0 : index
    %3 = vector.load %arg5[%c0_3, %c0_4] : memref<8x128xf32, #tpu.memory_space<vmem>>, vector<1x32xf32>
    %4 = vector.broadcast %3 : vector<1x32xf32> to vector<4x32xf32>
    %5 = arith.addf %2, %4 : vector<4x32xf32>
    %cst_5 = arith.constant 0.000000e+00 : f32
    %6 = vector.broadcast %cst_5 : f32 to vector<4x32xf32>
    %7 = arith.maximumf %5, %6 : vector<4x32xf32>
    %8 = arith.truncf %7 : vector<4x32xf32> to vector<4x32xbf16>
    %c0_6 = arith.constant 0 : index
    %c0_7 = arith.constant 0 : index
    %9 = vector.load %arg3[%c0_6, %c0_7] : memref<32x32xbf16, #tpu.memory_space<vmem>>, vector<32x32xbf16>
    %cst_8 = arith.constant dense<0.000000e+00> : vector<4x32xf32>
    %10 = tpu.matmul %8, %9, %cst_8 {dimension_numbers = #tpu.dot_dimension_numbers<[1], [0], [0], [1], [0, 0, 1, 1], [], []>} : vector<4x32xbf16>, vector<32x32xbf16>, vector<4x32xf32> -> vector<4x32xf32>
    %c1 = arith.constant 1 : index
    %c0_9 = arith.constant 0 : index
    %11 = vector.load %arg5[%c1, %c0_9] : memref<8x128xf32, #tpu.memory_space<vmem>>, vector<1x32xf32>
    %12 = vector.broadcast %11 : vector<1x32xf32> to vector<4x32xf32>
    %13 = arith.addf %10, %12 : vector<4x32xf32>
    %cst_10 = arith.constant 0.000000e+00 : f32
    %14 = vector.broadcast %cst_10 : f32 to vector<4x32xf32>
    %15 = arith.maximumf %13, %14 : vector<4x32xf32>
    %16 = arith.truncf %15 : vector<4x32xf32> to vector<4x32xbf16>
    %c0_11 = arith.constant 0 : index
    %c0_12 = arith.constant 0 : index
    %17 = vector.load %arg4[%c0_11, %c0_12] : memref<32x128xbf16, #tpu.memory_space<vmem>>, vector<32x128xbf16>
    %cst_13 = arith.constant dense<0.000000e+00> : vector<4x128xf32>
    %18 = tpu.matmul %16, %17, %cst_13 {dimension_numbers = #tpu.dot_dimension_numbers<[1], [0], [0], [1], [0, 0, 1, 1], [], []>} : vector<4x32xbf16>, vector<32x128xbf16>, vector<4x128xf32> -> vector<4x128xf32>
    %c2 = arith.constant 2 : index
    %c0_14 = arith.constant 0 : index
    %19 = vector.load %arg5[%c2, %c0_14] : memref<8x128xf32, #tpu.memory_space<vmem>>, vector<1x128xf32>
    %20 = vector.broadcast %19 : vector<1x128xf32> to vector<4x128xf32>
    %21 = arith.addf %18, %20 : vector<4x128xf32>
    %c0_15 = arith.constant 0 : index
    %c0_16 = arith.constant 0 : index
    %22 = vector.load %arg6[%c0_15, %c0_16] : memref<4x128xf32, #tpu.memory_space<vmem>>, vector<4x128xf32>
    tpu.vector_store %arg6[%c0_15, %c0_16], %21 {strides = array<i32>} : memref<4x128xf32, #tpu.memory_space<vmem>>, vector<4x128xf32>,
    return
  }
  func.func @transform_0(%arg0: i32) -> (i32, i32) {
    %c0_i32 = arith.constant 0 : i32
    %c0_i32_0 = arith.constant 0 : i32
    return %arg0, %c0_i32 : i32, i32
  }
  func.func @transform_1(%arg0: i32) -> (i32, i32) {
    %c0_i32 = arith.constant 0 : i32
    %c0_i32_0 = arith.constant 0 : i32
    %c0_i32_1 = arith.constant 0 : i32
    return %c0_i32, %c0_i32_0 : i32, i32
  }
  func.func @transform_2(%arg0: i32) -> (i32, i32) {
    %c0_i32 = arith.constant 0 : i32
    %c0_i32_0 = arith.constant 0 : i32
    %c0_i32_1 = arith.constant 0 : i32
    return %c0_i32, %c0_i32_0 : i32, i32
  }
  func.func @transform_3(%arg0: i32) -> (i32, i32) {
    %c0_i32 = arith.constant 0 : i32
    %c0_i32_0 = arith.constant 0 : i32
    %c0_i32_1 = arith.constant 0 : i32
    return %c0_i32, %c0_i32_0 : i32, i32
  }
  func.func @transform_4(%arg0: i32) -> (i32, i32) {
    %c0_i32 = arith.constant 0 : i32
    %c0_i32_0 = arith.constant 0 : i32
    %c0_i32_1 = arith.constant 0 : i32
    return %c0_i32, %c0_i32_0 : i32, i32
  }
  func.func @transform_5(%arg0: i32) -> (i32, i32) {
    %c0_i32 = arith.constant 0 : i32
    %c0_i32_0 = arith.constant 0 : i32
    return %arg0, %c0_i32 : i32, i32
  }
}

</mosaic_0001>

<bundles_post_ra>
// kernel: tpu_custom_call.1
= control target key start
LH: loop header
LB: loop body
LE: loop exit
PB: predicated region body
PF: predicated region fallthrough
CT: control target
= control target key end

     0   :  { %10 = vsyncpa [#allocation3], 0  ;;  %s546_s0 = inlined_call_operand.hbm [shape: bf16[4,16], index: 0, kind: input, shape index: {}]   ;;  %s547_s1 = inlined_call_operand.hbm [shape: bf16[16,32], index: 1, kind: input, shape index: {}]   ;;  %s548_s2 = inlined_call_operand.hbm [shape: bf16[32,32], index: 2, kind: input, shape index: {}]   ;;  %s549_s3 = inlined_call_operand.hbm [shape: bf16[32,128], index: 3, kind: input, shape index: {}]   ;;  %s550_s4 = inlined_call_operand.hbm [shape: f32[8,128], index: 4, kind: input, shape index: {}]   ;;  %s551_s5 = inlined_call_operand.hbm [shape: f32[4,128], index: 5, kind: output, shape index: {}]  }
   0x1   :  { %11 = vsyncpa [#allocation6], 0 }
   0x2   :  { %12 = vsyncpa [#allocation9], 0 }
   0x3   :  { %13 = vsyncpa [#allocation4], 0  ;;  %s479_s18 = smov [#allocation5]  }
   0x4   :  { %s29_s19 = sshll.u32 %s479_s18, 4  ;;  %s30_s19 = int_to_ptr.vmem [resolvable:$true] %s29_s19 }
   0x5   :  { %s359_s20 = scalar_lea.vmem %s30_s19, 128  ;;  %p364_p1 = scmp.lt.s32.totalorder %s30_s19, %s30_s19 }
   0x6   :  { %p360_p0 = scmp.ne.s32.totalorder %s30_s19, %s359_s20  ;;  %p365_p2 = scmp.lt.s32.totalorder %s359_s20, %s359_s20 }
   0x8   :  { %p366_p3 = por %p365_p2, %p364_p1 }
   0xa   :  { %p367_p4 = pnand %p366_p3, %p360_p0 }
   0xc   :  { %370 = shalt.err (!%p367_p4)
}
   0xd   :  { %s480_s21 = smov 64   ;;  %s481_s22 = smov 4  }
   0xe   :  { %35 = dma.hbm_to_vmem [thread:$0]  %s547_s1, 128, %s30_s19, [#allocation6], %s480_s21, %s480_s21, %s481_s22  }
   0xf   :  { %s482_s25 = smov [#allocation8]   ;;  %s483_s27 = smov [#allocation2]  }
  0x10   :  { %s53_s26 = sshll.u32 %s482_s25, 4  ;;  %s20_s28 = sshll.u32 %s483_s27, 4  ;;  %s54_s26 = int_to_ptr.vmem [resolvable:$true] %s53_s26  ;;  %s21_s28 = int_to_ptr.vmem [resolvable:$true] %s20_s28 }
  0x11   :  { %s379_s29 = scalar_lea.vmem %s54_s26, 256  ;;  %p384_p6 = scmp.lt.s32.totalorder %s54_s26, %s54_s26 }
  0x12   :  { %p380_p5 = scmp.ne.s32.totalorder %s54_s26, %s379_s29  ;;  %p385_p7 = scmp.lt.s32.totalorder %s379_s29, %s379_s29 }
  0x14   :  { %p386_p8 = por %p385_p7, %p384_p6 }
  0x16   :  { %p387_p9 = pnand %p386_p8, %p380_p5 }
  0x18   :  { %390 = shalt.err (!%p387_p9)
}
  0x19   :  { %59 = dma.hbm_to_vmem [thread:$0]  %s549_s3, 256, %s54_s26, [#allocation9], %s480_s21, %s480_s21, %s481_s22  }
  0x1a   :  { %s399_s1 = scalar_lea.vmem %s21_s28, 32  ;;  %p404_p11 = scmp.lt.s32.totalorder %s21_s28, %s21_s28 }
  0x1b   :  { %p400_p10 = scmp.ne.s32.totalorder %s21_s28, %s399_s1  ;;  %p405_p12 = scmp.lt.s32.totalorder %s399_s1, %s399_s1 }
  0x1d   :  { %p406_p13 = por %p405_p12, %p404_p11 }
  0x1f   :  { %p407_p0 = pnand %p406_p13, %p400_p10 }
  0x21   :  { %410 = shalt.err (!%p407_p0)
}
  0x22   :  { %23 = dma.hbm_to_vmem [thread:$0]  %s546_s0, 32, %s21_s28, [#allocation3]  }
  0x23   :  { %s484_s9 = smov [#allocation7]   ;;  %s485_s11 = smov [#allocation10]  }
  0x24   :  { %s41_s10 = sshll.u32 %s484_s9, 4  ;;  %s66_s12 = sshll.u32 %s485_s11, 4  ;;  %s42_s10 = int_to_ptr.vmem [resolvable:$true] %s41_s10  ;;  %s67_s12 = int_to_ptr.vmem [resolvable:$true] %s66_s12 }
  0x25   :  { %s419_s13 = scalar_lea.vmem %s42_s10, 256  ;;  %p424_p2 = scmp.lt.s32.totalorder %s42_s10, %s42_s10 }
  0x26   :  { %p420_p1 = scmp.ne.s32.totalorder %s42_s10, %s419_s13  ;;  %p425_p3 = scmp.lt.s32.totalorder %s419_s13, %s419_s13 }
  0x28   :  { %p426_p4 = por %p425_p3, %p424_p2 }
  0x2a   :  { %p427_p5 = pnand %p426_p4, %p420_p1 }
  0x2c   :  { %430 = shalt.err (!%p427_p5)
}
  0x2d   :  { %47 = dma.hbm_to_vmem [thread:$0]  %s548_s2, 256, %s42_s10, [#allocation6], %s480_s21, %s480_s21, %s481_s22  }
  0x2e   :  { %s439_s0 = scalar_lea.vmem %s67_s12, 128  ;;  %p444_p7 = scmp.lt.s32.totalorder %s67_s12, %s67_s12 }
  0x2f   :  { %p440_p6 = scmp.ne.s32.totalorder %s67_s12, %s439_s0  ;;  %p445_p8 = scmp.lt.s32.totalorder %s439_s0, %s439_s0 }
  0x31   :  { %p446_p9 = por %p445_p8, %p444_p7 }
  0x33   :  { %p447_p10 = pnand %p446_p9, %p440_p6 }
  0x35   :  { %450 = shalt.err (!%p447_p10)
}
  0x36   :  { %69 = dma.hbm_to_vmem [thread:$0]  %s550_s4, 128, %s67_s12, [#allocation9]  }
  0x37   :  { %471 = dma.done.wait [#allocation3], 32  }
  0x38   :  { %472 = vsyncadd [#allocation3], 4294967264 }
  0x39   :  { %473 = dma.done.wait [#allocation6], 384  }
  0x3a   :  { %474 = vsyncadd [#allocation6], 4294966912 }
  0x3b   :  { %475 = dma.done.wait [#allocation9], 384  }
  0x3c   :  { %476 = vsyncadd [#allocation9], 4294966912  ;;  %v486_v0 = vmov 0.0   ;;  %vm487_vm0 = vmmov 0   ;;  %v346_v1 = vld [vmem:[#allocation5] sm:$0xff]   ;;  %vm100_vm1 = vcmask 130048  }
  0x3d   :  { %314 = vmatprep.subr.bf16.mxu0 %v486_v0  ;;  %316 = vmatprep.mubr.msk.bf16.mxu0 %vm487_vm0, %v486_v0  ;;  %v86_v2 = vld [vmem:[#allocation2] sm:$0x3]  ;;  %v347_v3 = vld [vmem:[#allocation7 + $0x8] sm:$0xff]   ;;  %v348_v4 = vld [vmem:[#allocation7] sm:$0xff]   ;;  %vm167_vm2 = vcmask 261120   ;;  %s488_s2 = smov [#allocation11]  }
  0x3e   :  { %320 = vmatprep.subr.bf16.mxu1 %v486_v0  ;;  %324 = vmatprep.mubr.msk.bf16.mxu1 %vm487_vm0, %v486_v0  ;;  %v349_v5 = vld [vmem:[#allocation8 + $0x8] sm:$0xff]   ;;  %v295_v6 = vld [vmem:[#allocation10] ss:$0 sm:$0xff]  ;;  %v350_v14 = vld [vmem:[#allocation8] sm:$0xff]   ;;  %s284_s4 = sshll.u32 %s488_s2, 4  ;;  %s285_s4 = int_to_ptr.vmem [resolvable:$true] %s284_s4 }
  0x3f   :  { %315 = vmatpush3.bf16.msra.mxu0 %v346_v1  ;;  %321 = vmatpush3.bf16.msra.mxu1 %v347_v3  ;;  %v298_v15 = vld [vmem:[#allocation10 + $0x1] ss:$0 sm:$0xff]  ;;  %v302_v23 = vld [vmem:[#allocation10 + $0x2] ss:$0 sm:$0xff]  ;;  %s451_s17 = scalar_lea.vmem %s285_s4, 64  ;;  %p456_p12 = scmp.lt.s32.totalorder %s285_s4, %s285_s4 }
  0x40   :  { %328 = vmatprep.subr.bf16.mxu0 %v486_v0  ;;  %322 = vmatprep.subr.bf16.mxu1 %v486_v0  ;;  %p452_p11 = scmp.ne.s32.totalorder %s285_s4, %s451_s17  ;;  %p457_p13 = scmp.lt.s32.totalorder %s451_s17, %s451_s17 }
  0x42   :  { %317 = vmatmul.mubr.msk.bf16.vlgmr.msra.gmra.mxu0 %vm100_vm1, %v86_v2  ;;  %p458_p0 = por %p457_p13, %p456_p12 }
  0x43   :  { %332 = vmatprep.mubr.msk.bf16.mxu0 %vm487_vm0, %v486_v0  ;;  %323 = vmatpush3.bf16.msra.mxu1 %v348_v4 }
  0x44   :  { %329 = vmatpush3.bf16.msra.mxu0 %v349_v5  ;;  %p459_p1 = pnand %p458_p0, %p452_p11 }
  0x45   :  { %330 = vmatprep.subr.bf16.mxu0 %v486_v0 }
  0x48   :  { %331 = vmatpush3.bf16.msra.mxu0 %v350_v14 }
 0x102   :  { %v138_v7 = vpop.f32.mrf.mxu0 }
 0x103   :  { %v139_v8 = vadd.f32 %v295_v6, %v138_v7 }
 0x104   :  { %v318_v9 = vpop.f32.mrf.mxu0 }
 0x105   :  { %v144_v10 = vmax.f32 %v139_v8, 0.0 }
 0x106   :  { %v141_v11 = vpop.f32.mrf.mxu0 }
 0x107   :  { %v145_v12 = vpack.c.bf16 %v144_v10, %v144_v10 }
 0x108   :  { %v319_v13 = vpop.f32.mrf.mxu0 }
 0x109   :  { %325 = vmatmul.mubr.msk.bf16.vlgmr.msra.gmra.mxu1 %vm167_vm2, %v145_v12 }
 0x1c9   :  { %v205_v16 = vpop.f32.mrf.mxu1 }
 0x1ca   :  { %v206_v17 = vadd.f32 %v298_v15, %v205_v16 }
 0x1cb   :  { %v326_v18 = vpop.f32.mrf.mxu1 }
 0x1cc   :  { %v211_v19 = vmax.f32 %v206_v17, 0.0 }
 0x1cd   :  { %v208_v20 = vpop.f32.mrf.mxu1 }
 0x1ce   :  { %v212_v21 = vpack.c.bf16 %v211_v19, %v211_v19 }
 0x1cf   :  { %v327_v22 = vpop.f32.mrf.mxu1 }
 0x1d0   :  { %333 = vmatmul.mubr.msk.bf16.vlgmr.msra.gmra.mxu0 %vm167_vm2, %v212_v21 }
 0x290   :  { %v271_v24 = vpop.f32.mrf.mxu0 }
 0x291   :  { %v272_v25 = vadd.f32 %v302_v23, %v271_v24 }
 0x292   :  { %v334_v26 = vpop.f32.mrf.mxu0 }
 0x293   :  { %277 = vst [vmem:[#allocation11] sm:$0xf] %v272_v25 }
 0x294   :  { %v274_v27 = vpop.f32.mrf.mxu0 }
 0x295   :  { %462 = shalt.err (!%p459_p1)
}
 0x296   :  { %287 = dma.vmem_to_hbm [thread:$0]  %s285_s4, 64, %s551_s5, [#allocation4]   ;;  %v335_v28 = vpop.f32.mrf.mxu0 }
 0x297   :  { %477 = dma.done.wait [#allocation4], 64  }
 0x298   :  { %478 = vsyncadd [#allocation4], 4294967232 }
 0x299   :  { %291 = vsyncpa [#allocation3], 1 }
 0x29a   :  { %292 = vsyncpa [#allocation6], 1 }
 0x29b   :  { %293 = vsyncpa [#allocation9], 1 }
 0x29c   :  { %294 = vsyncpa [#allocation4], 1 }

</bundles_post_ra>
